<compile_context>
chip_gen: v7x
topology: tpu7x:2x2x1
jax: 0.10.0
libtpu: 0.0.40
codegen_flags: <defaults>
</compile_context>

<pallas_src>
import math

import jax
import jax.numpy as jnp
from jax.experimental import pallas as pl
from jax.experimental.pallas import tpu as pltpu


# ----------------------------- Pallas kernel -------------------------------- #
def _time_emb_kernel(t_ref, table_ref, w1_ref, b1_ref, w2_ref, b2_ref, o_ref):
    # t_ref: (B, 1) int32 timesteps; table_ref: (T, d_model) f32 sinusoidal table.
    T, d_model = table_ref.shape
    B = t_ref.shape[0]

    t = t_ref[...]                                       # (B, 1) int32
    tbl = table_ref[...]                                 # (T, d_model) f32

    # Fused embedding lookup: exact masked-select accumulation over table rows.
    # sel is exactly 1.0 / 0.0, so x == table[t] exactly (matches nn.Embedding).
    x = jnp.zeros((B, d_model), jnp.float32)
    for j in range(T):                                   # static unroll (T is small)
        sel = jnp.where(t == j, 1.0, 0.0)                # (B, 1)
        x = x + sel * tbl[j:j + 1, :]                    # (B,1)*(1,d_model) -> (B,d_model)

    # Linear -> exact GELU (erf form, matches torch.nn.GELU() default) -> Linear.
    h = jnp.dot(x, w1_ref[...], preferred_element_type=jnp.float32) + b1_ref[...]
    h = 0.5 * h * (1.0 + jax.lax.erf(h * (1.0 / math.sqrt(2.0))))
    o = jnp.dot(h, w2_ref[...], preferred_element_type=jnp.float32) + b2_ref[...]
    o_ref[...] = o.astype(o_ref.dtype)


def time_embedding_forward(t, emb_table, w1, b1, w2, b2):
    """t: (B,) int timesteps in [0, T). Returns (B, dim) f32 == PyTorch forward.

    Note: out-of-range t yields a zero embedding row here (PyTorch would raise).
    """
    B = t.shape[0]
    dim = w1.shape[1]
    t2d = t.astype(jnp.int32).reshape(B, 1)              # 2-D so it sits cleanly in VMEM
    return pl.pallas_call(
        _time_emb_kernel,
        out_shape=jax.ShapeDtypeStruct((B, dim), jnp.float32),
        # No grid: single invocation, every operand mapped whole into VMEM
        # (no pipeline double-buffering for operands read exactly once).
        in_specs=[pl.BlockSpec(memory_space=pltpu.MemorySpace.VMEM)
                  for _ in range(6)],
        out_specs=pl.BlockSpec(memory_space=pltpu.MemorySpace.VMEM),
    )(t2d, emb_table, w1, b1, w2, b2)


# ------------------------- parameter construction --------------------------- #
def make_sinusoidal_table(T, d_model):
    """Reproduces the PyTorch table construction exactly."""
    assert d_model % 2 == 0
    freqs = jnp.arange(0, d_model, 2, dtype=jnp.float32) / d_model * math.log(10000.0)
    freqs = jnp.exp(-freqs)                                # (d_model//2,)
    pos = jnp.arange(T, dtype=jnp.float32)                 # (T,)
    emb = pos[:, None] * freqs[None, :]                    # (T, d_model//2)
    emb = jnp.stack([jnp.sin(emb), jnp.cos(emb)], axis=-1) # (T, d_model//2, 2)
    return emb.reshape(T, d_model)                         # (T, d_model)


def xavier_uniform(key, fan_in, fan_out):
    bound = math.sqrt(6.0 / (fan_in + fan_out))
    # stored directly as (in, out) so the kernel does x @ W (== x @ W_torch.T)
    return jax.random.uniform(
        key, (fan_in, fan_out), dtype=jnp.float32, minval=-bound, maxval=bound
    )


# ---------------------------------- main ------------------------------------ #
if __name__ == "__main__":
    T, d_model, dim, B = 16, 32, 64, 8

    key = jax.random.PRNGKey(0)
    k_w1, k_w2, k_t = jax.random.split(key, 3)

    emb_table = make_sinusoidal_table(T, d_model)
    w1 = xavier_uniform(k_w1, d_model, dim)
    b1 = jnp.zeros((1, dim), jnp.float32)
    w2 = xavier_uniform(k_w2, dim, dim)
    b2 = jnp.zeros((1, dim), jnp.float32)

    t = jax.random.randint(k_t, (B,), 0, T, dtype=jnp.int32)

    fwd = jax.jit(time_embedding_forward)
    out = jax.block_until_ready(fwd(t, emb_table, w1, b1, w2, b2))

    # reference check in plain JAX (exact gather + exact-erf GELU, same as torch)
    x_ref = jnp.take(emb_table, t, axis=0)
    h_ref = jax.nn.gelu(x_ref @ w1 + b1, approximate=False)
    ref = h_ref @ w2 + b2
    assert out.shape == (B, dim)
    assert jnp.allclose(out, ref, atol=1e-5, rtol=1e-5), "mismatch vs reference"

    print("KERNEL_OK")
</pallas_src>

<mosaic_0001>
module attributes {stable_mosaic.version = 11 : i64} {
  func.func @_time_emb_kernel(%arg0: memref<8x1xi32, #tpu.memory_space<vmem>>, %arg1: memref<16x32xf32, #tpu.memory_space<vmem>>, %arg2: memref<32x64xf32, #tpu.memory_space<vmem>>, %arg3: memref<1x64xf32, #tpu.memory_space<vmem>>, %arg4: memref<64x64xf32, #tpu.memory_space<vmem>>, %arg5: memref<1x64xf32, #tpu.memory_space<vmem>>, %arg6: memref<8x64xf32, #tpu.memory_space<vmem>>) attributes {dimension_semantics = [], scalar_prefetch = 0 : i64, scratch_operands = 0 : i64, tpu.core_type = #tpu.core_type<tc>} {
    %c0 = arith.constant 0 : index
    %c0_0 = arith.constant 0 : index
    %0 = vector.load %arg0[%c0, %c0_0] : memref<8x1xi32, #tpu.memory_space<vmem>>, vector<8x1xi32>
    %c0_1 = arith.constant 0 : index
    %c0_2 = arith.constant 0 : index
    %1 = vector.load %arg1[%c0_1, %c0_2] : memref<16x32xf32, #tpu.memory_space<vmem>>, vector<16x32xf32>
    %cst = arith.constant 0.000000e+00 : f32
    %2 = vector.broadcast %cst : f32 to vector<8x32xf32>
    %c0_i32 = arith.constant 0 : i32
    %3 = vector.broadcast %c0_i32 : i32 to vector<8x1xi32>
    %4 = arith.cmpi eq, %0, %3 : vector<8x1xi32>
    %cst_3 = arith.constant 1.000000e+00 : f32
    %cst_4 = arith.constant 0.000000e+00 : f32
    %5 = vector.broadcast %cst_3 : f32 to vector<8x1xf32>
    %6 = vector.broadcast %cst_4 : f32 to vector<8x1xf32>
    %7 = arith.select %4, %5, %6 : vector<8x1xi1>, vector<8x1xf32>
    %8 = vector.extract_strided_slice %1 {offsets = [0, 0], sizes = [1, 32], strides = [1, 1]} : vector<16x32xf32> to vector<1x32xf32>
    %9 = vector.broadcast %7 : vector<8x1xf32> to vector<8x32xf32>
    %10 = vector.broadcast %8 : vector<1x32xf32> to vector<8x32xf32>
    %11 = arith.mulf %9, %10 : vector<8x32xf32>
    %12 = arith.addf %2, %11 : vector<8x32xf32>
    %c1_i32 = arith.constant 1 : i32
    %13 = vector.broadcast %c1_i32 : i32 to vector<8x1xi32>
    %14 = arith.cmpi eq, %0, %13 : vector<8x1xi32>
    %cst_5 = arith.constant 1.000000e+00 : f32
    %cst_6 = arith.constant 0.000000e+00 : f32
    %15 = vector.broadcast %cst_5 : f32 to vector<8x1xf32>
    %16 = vector.broadcast %cst_6 : f32 to vector<8x1xf32>
    %17 = arith.select %14, %15, %16 : vector<8x1xi1>, vector<8x1xf32>
    %18 = vector.extract_strided_slice %1 {offsets = [1, 0], sizes = [1, 32], strides = [1, 1]} : vector<16x32xf32> to vector<1x32xf32>
    %19 = vector.broadcast %17 : vector<8x1xf32> to vector<8x32xf32>
    %20 = vector.broadcast %18 : vector<1x32xf32> to vector<8x32xf32>
    %21 = arith.mulf %19, %20 : vector<8x32xf32>
    %22 = arith.addf %12, %21 : vector<8x32xf32>
    %c2_i32 = arith.constant 2 : i32
    %23 = vector.broadcast %c2_i32 : i32 to vector<8x1xi32>
    %24 = arith.cmpi eq, %0, %23 : vector<8x1xi32>
    %cst_7 = arith.constant 1.000000e+00 : f32
    %cst_8 = arith.constant 0.000000e+00 : f32
    %25 = vector.broadcast %cst_7 : f32 to vector<8x1xf32>
    %26 = vector.broadcast %cst_8 : f32 to vector<8x1xf32>
    %27 = arith.select %24, %25, %26 : vector<8x1xi1>, vector<8x1xf32>
    %28 = vector.extract_strided_slice %1 {offsets = [2, 0], sizes = [1, 32], strides = [1, 1]} : vector<16x32xf32> to vector<1x32xf32>
    %29 = vector.broadcast %27 : vector<8x1xf32> to vector<8x32xf32>
    %30 = vector.broadcast %28 : vector<1x32xf32> to vector<8x32xf32>
    %31 = arith.mulf %29, %30 : vector<8x32xf32>
    %32 = arith.addf %22, %31 : vector<8x32xf32>
    %c3_i32 = arith.constant 3 : i32
    %33 = vector.broadcast %c3_i32 : i32 to vector<8x1xi32>
    %34 = arith.cmpi eq, %0, %33 : vector<8x1xi32>
    %cst_9 = arith.constant 1.000000e+00 : f32
    %cst_10 = arith.constant 0.000000e+00 : f32
    %35 = vector.broadcast %cst_9 : f32 to vector<8x1xf32>
    %36 = vector.broadcast %cst_10 : f32 to vector<8x1xf32>
    %37 = arith.select %34, %35, %36 : vector<8x1xi1>, vector<8x1xf32>
    %38 = vector.extract_strided_slice %1 {offsets = [3, 0], sizes = [1, 32], strides = [1, 1]} : vector<16x32xf32> to vector<1x32xf32>
    %39 = vector.broadcast %37 : vector<8x1xf32> to vector<8x32xf32>
    %40 = vector.broadcast %38 : vector<1x32xf32> to vector<8x32xf32>
    %41 = arith.mulf %39, %40 : vector<8x32xf32>
    %42 = arith.addf %32, %41 : vector<8x32xf32>
    %c4_i32 = arith.constant 4 : i32
    %43 = vector.broadcast %c4_i32 : i32 to vector<8x1xi32>
    %44 = arith.cmpi eq, %0, %43 : vector<8x1xi32>
    %cst_11 = arith.constant 1.000000e+00 : f32
    %cst_12 = arith.constant 0.000000e+00 : f32
    %45 = vector.broadcast %cst_11 : f32 to vector<8x1xf32>
    %46 = vector.broadcast %cst_12 : f32 to vector<8x1xf32>
    %47 = arith.select %44, %45, %46 : vector<8x1xi1>, vector<8x1xf32>
    %48 = vector.extract_strided_slice %1 {offsets = [4, 0], sizes = [1, 32], strides = [1, 1]} : vector<16x32xf32> to vector<1x32xf32>
    %49 = vector.broadcast %47 : vector<8x1xf32> to vector<8x32xf32>
    %50 = vector.broadcast %48 : vector<1x32xf32> to vector<8x32xf32>
    %51 = arith.mulf %49, %50 : vector<8x32xf32>
    %52 = arith.addf %42, %51 : vector<8x32xf32>
    %c5_i32 = arith.constant 5 : i32
    %53 = vector.broadcast %c5_i32 : i32 to vector<8x1xi32>
    %54 = arith.cmpi eq, %0, %53 : vector<8x1xi32>
    %cst_13 = arith.constant 1.000000e+00 : f32
    %cst_14 = arith.constant 0.000000e+00 : f32
    %55 = vector.broadcast %cst_13 : f32 to vector<8x1xf32>
    %56 = vector.broadcast %cst_14 : f32 to vector<8x1xf32>
    %57 = arith.select %54, %55, %56 : vector<8x1xi1>, vector<8x1xf32>
    %58 = vector.extract_strided_slice %1 {offsets = [5, 0], sizes = [1, 32], strides = [1, 1]} : vector<16x32xf32> to vector<1x32xf32>
    %59 = vector.broadcast %57 : vector<8x1xf32> to vector<8x32xf32>
    %60 = vector.broadcast %58 : vector<1x32xf32> to vector<8x32xf32>
    %61 = arith.mulf %59, %60 : vector<8x32xf32>
    %62 = arith.addf %52, %61 : vector<8x32xf32>
    %c6_i32 = arith.constant 6 : i32
    %63 = vector.broadcast %c6_i32 : i32 to vector<8x1xi32>
    %64 = arith.cmpi eq, %0, %63 : vector<8x1xi32>
    %cst_15 = arith.constant 1.000000e+00 : f32
    %cst_16 = arith.constant 0.000000e+00 : f32
    %65 = vector.broadcast %cst_15 : f32 to vector<8x1xf32>
    %66 = vector.broadcast %cst_16 : f32 to vector<8x1xf32>
    %67 = arith.select %64, %65, %66 : vector<8x1xi1>, vector<8x1xf32>
    %68 = vector.extract_strided_slice %1 {offsets = [6, 0], sizes = [1, 32], strides = [1, 1]} : vector<16x32xf32> to vector<1x32xf32>
    %69 = vector.broadcast %67 : vector<8x1xf32> to vector<8x32xf32>
    %70 = vector.broadcast %68 : vector<1x32xf32> to vector<8x32xf32>
    %71 = arith.mulf %69, %70 : vector<8x32xf32>
    %72 = arith.addf %62, %71 : vector<8x32xf32>
    %c7_i32 = arith.constant 7 : i32
    %73 = vector.broadcast %c7_i32 : i32 to vector<8x1xi32>
    %74 = arith.cmpi eq, %0, %73 : vector<8x1xi32>
    %cst_17 = arith.constant 1.000000e+00 : f32
    %cst_18 = arith.constant 0.000000e+00 : f32
    %75 = vector.broadcast %cst_17 : f32 to vector<8x1xf32>
    %76 = vector.broadcast %cst_18 : f32 to vector<8x1xf32>
    %77 = arith.select %74, %75, %76 : vector<8x1xi1>, vector<8x1xf32>
    %78 = vector.extract_strided_slice %1 {offsets = [7, 0], sizes = [1, 32], strides = [1, 1]} : vector<16x32xf32> to vector<1x32xf32>
    %79 = vector.broadcast %77 : vector<8x1xf32> to vector<8x32xf32>
    %80 = vector.broadcast %78 : vector<1x32xf32> to vector<8x32xf32>
    %81 = arith.mulf %79, %80 : vector<8x32xf32>
    %82 = arith.addf %72, %81 : vector<8x32xf32>
    %c8_i32 = arith.constant 8 : i32
    %83 = vector.broadcast %c8_i32 : i32 to vector<8x1xi32>
    %84 = arith.cmpi eq, %0, %83 : vector<8x1xi32>
    %cst_19 = arith.constant 1.000000e+00 : f32
    %cst_20 = arith.constant 0.000000e+00 : f32
    %85 = vector.broadcast %cst_19 : f32 to vector<8x1xf32>
    %86 = vector.broadcast %cst_20 : f32 to vector<8x1xf32>
    %87 = arith.select %84, %85, %86 : vector<8x1xi1>, vector<8x1xf32>
    %88 = vector.extract_strided_slice %1 {offsets = [8, 0], sizes = [1, 32], strides = [1, 1]} : vector<16x32xf32> to vector<1x32xf32>
    %89 = vector.broadcast %87 : vector<8x1xf32> to vector<8x32xf32>
    %90 = vector.broadcast %88 : vector<1x32xf32> to vector<8x32xf32>
    %91 = arith.mulf %89, %90 : vector<8x32xf32>
    %92 = arith.addf %82, %91 : vector<8x32xf32>
    %c9_i32 = arith.constant 9 : i32
    %93 = vector.broadcast %c9_i32 : i32 to vector<8x1xi32>
    %94 = arith.cmpi eq, %0, %93 : vector<8x1xi32>
    %cst_21 = arith.constant 1.000000e+00 : f32
    %cst_22 = arith.constant 0.000000e+00 : f32
    %95 = vector.broadcast %cst_21 : f32 to vector<8x1xf32>
    %96 = vector.broadcast %cst_22 : f32 to vector<8x1xf32>
    %97 = arith.select %94, %95, %96 : vector<8x1xi1>, vector<8x1xf32>
    %98 = vector.extract_strided_slice %1 {offsets = [9, 0], sizes = [1, 32], strides = [1, 1]} : vector<16x32xf32> to vector<1x32xf32>
    %99 = vector.broadcast %97 : vector<8x1xf32> to vector<8x32xf32>
    %100 = vector.broadcast %98 : vector<1x32xf32> to vector<8x32xf32>
    %101 = arith.mulf %99, %100 : vector<8x32xf32>
    %102 = arith.addf %92, %101 : vector<8x32xf32>
    %c10_i32 = arith.constant 10 : i32
    %103 = vector.broadcast %c10_i32 : i32 to vector<8x1xi32>
    %104 = arith.cmpi eq, %0, %103 : vector<8x1xi32>
    %cst_23 = arith.constant 1.000000e+00 : f32
    %cst_24 = arith.constant 0.000000e+00 : f32
    %105 = vector.broadcast %cst_23 : f32 to vector<8x1xf32>
    %106 = vector.broadcast %cst_24 : f32 to vector<8x1xf32>
    %107 = arith.select %104, %105, %106 : vector<8x1xi1>, vector<8x1xf32>
    %108 = vector.extract_strided_slice %1 {offsets = [10, 0], sizes = [1, 32], strides = [1, 1]} : vector<16x32xf32> to vector<1x32xf32>
    %109 = vector.broadcast %107 : vector<8x1xf32> to vector<8x32xf32>
    %110 = vector.broadcast %108 : vector<1x32xf32> to vector<8x32xf32>
    %111 = arith.mulf %109, %110 : vector<8x32xf32>
    %112 = arith.addf %102, %111 : vector<8x32xf32>
    %c11_i32 = arith.constant 11 : i32
    %113 = vector.broadcast %c11_i32 : i32 to vector<8x1xi32>
    %114 = arith.cmpi eq, %0, %113 : vector<8x1xi32>
    %cst_25 = arith.constant 1.000000e+00 : f32
    %cst_26 = arith.constant 0.000000e+00 : f32
    %115 = vector.broadcast %cst_25 : f32 to vector<8x1xf32>
    %116 = vector.broadcast %cst_26 : f32 to vector<8x1xf32>
    %117 = arith.select %114, %115, %116 : vector<8x1xi1>, vector<8x1xf32>
    %118 = vector.extract_strided_slice %1 {offsets = [11, 0], sizes = [1, 32], strides = [1, 1]} : vector<16x32xf32> to vector<1x32xf32>
    %119 = vector.broadcast %117 : vector<8x1xf32> to vector<8x32xf32>
    %120 = vector.broadcast %118 : vector<1x32xf32> to vector<8x32xf32>
    %121 = arith.mulf %119, %120 : vector<8x32xf32>
    %122 = arith.addf %112, %121 : vector<8x32xf32>
    %c12_i32 = arith.constant 12 : i32
    %123 = vector.broadcast %c12_i32 : i32 to vector<8x1xi32>
    %124 = arith.cmpi eq, %0, %123 : vector<8x1xi32>
    %cst_27 = arith.constant 1.000000e+00 : f32
    %cst_28 = arith.constant 0.000000e+00 : f32
    %125 = vector.broadcast %cst_27 : f32 to vector<8x1xf32>
    %126 = vector.broadcast %cst_28 : f32 to vector<8x1xf32>
    %127 = arith.select %124, %125, %126 : vector<8x1xi1>, vector<8x1xf32>
    %128 = vector.extract_strided_slice %1 {offsets = [12, 0], sizes = [1, 32], strides = [1, 1]} : vector<16x32xf32> to vector<1x32xf32>
    %129 = vector.broadcast %127 : vector<8x1xf32> to vector<8x32xf32>
    %130 = vector.broadcast %128 : vector<1x32xf32> to vector<8x32xf32>
    %131 = arith.mulf %129, %130 : vector<8x32xf32>
    %132 = arith.addf %122, %131 : vector<8x32xf32>
    %c13_i32 = arith.constant 13 : i32
    %133 = vector.broadcast %c13_i32 : i32 to vector<8x1xi32>
    %134 = arith.cmpi eq, %0, %133 : vector<8x1xi32>
    %cst_29 = arith.constant 1.000000e+00 : f32
    %cst_30 = arith.constant 0.000000e+00 : f32
    %135 = vector.broadcast %cst_29 : f32 to vector<8x1xf32>
    %136 = vector.broadcast %cst_30 : f32 to vector<8x1xf32>
    %137 = arith.select %134, %135, %136 : vector<8x1xi1>, vector<8x1xf32>
    %138 = vector.extract_strided_slice %1 {offsets = [13, 0], sizes = [1, 32], strides = [1, 1]} : vector<16x32xf32> to vector<1x32xf32>
    %139 = vector.broadcast %137 : vector<8x1xf32> to vector<8x32xf32>
    %140 = vector.broadcast %138 : vector<1x32xf32> to vector<8x32xf32>
    %141 = arith.mulf %139, %140 : vector<8x32xf32>
    %142 = arith.addf %132, %141 : vector<8x32xf32>
    %c14_i32 = arith.constant 14 : i32
    %143 = vector.broadcast %c14_i32 : i32 to vector<8x1xi32>
    %144 = arith.cmpi eq, %0, %143 : vector<8x1xi32>
    %cst_31 = arith.constant 1.000000e+00 : f32
    %cst_32 = arith.constant 0.000000e+00 : f32
    %145 = vector.broadcast %cst_31 : f32 to vector<8x1xf32>
    %146 = vector.broadcast %cst_32 : f32 to vector<8x1xf32>
    %147 = arith.select %144, %145, %146 : vector<8x1xi1>, vector<8x1xf32>
    %148 = vector.extract_strided_slice %1 {offsets = [14, 0], sizes = [1, 32], strides = [1, 1]} : vector<16x32xf32> to vector<1x32xf32>
    %149 = vector.broadcast %147 : vector<8x1xf32> to vector<8x32xf32>
    %150 = vector.broadcast %148 : vector<1x32xf32> to vector<8x32xf32>
    %151 = arith.mulf %149, %150 : vector<8x32xf32>
    %152 = arith.addf %142, %151 : vector<8x32xf32>
    %c15_i32 = arith.constant 15 : i32
    %153 = vector.broadcast %c15_i32 : i32 to vector<8x1xi32>
    %154 = arith.cmpi eq, %0, %153 : vector<8x1xi32>
    %cst_33 = arith.constant 1.000000e+00 : f32
    %cst_34 = arith.constant 0.000000e+00 : f32
    %155 = vector.broadcast %cst_33 : f32 to vector<8x1xf32>
    %156 = vector.broadcast %cst_34 : f32 to vector<8x1xf32>
    %157 = arith.select %154, %155, %156 : vector<8x1xi1>, vector<8x1xf32>
    %158 = vector.extract_strided_slice %1 {offsets = [15, 0], sizes = [1, 32], strides = [1, 1]} : vector<16x32xf32> to vector<1x32xf32>
    %159 = vector.broadcast %157 : vector<8x1xf32> to vector<8x32xf32>
    %160 = vector.broadcast %158 : vector<1x32xf32> to vector<8x32xf32>
    %161 = arith.mulf %159, %160 : vector<8x32xf32>
    %162 = arith.addf %152, %161 : vector<8x32xf32>
    %c0_35 = arith.constant 0 : index
    %c0_36 = arith.constant 0 : index
    %163 = vector.load %arg2[%c0_35, %c0_36] : memref<32x64xf32, #tpu.memory_space<vmem>>, vector<32x64xf32>
    %cst_37 = arith.constant dense<0.000000e+00> : vector<8x64xf32>
    %164 = tpu.matmul %162, %163, %cst_37 {dimension_numbers = #tpu.dot_dimension_numbers<[1], [0], [0], [1], [0, 0, 1, 1], [], []>} : vector<8x32xf32>, vector<32x64xf32>, vector<8x64xf32> -> vector<8x64xf32>
    %c0_38 = arith.constant 0 : index
    %c0_39 = arith.constant 0 : index
    %165 = vector.load %arg3[%c0_38, %c0_39] : memref<1x64xf32, #tpu.memory_space<vmem>>, vector<1x64xf32>
    %166 = vector.broadcast %165 : vector<1x64xf32> to vector<8x64xf32>
    %167 = arith.addf %164, %166 : vector<8x64xf32>
    %cst_40 = arith.constant 5.000000e-01 : f32
    %168 = vector.broadcast %cst_40 : f32 to vector<8x64xf32>
    %169 = arith.mulf %168, %167 : vector<8x64xf32>
    %cst_41 = arith.constant 0.707106769 : f32
    %170 = vector.broadcast %cst_41 : f32 to vector<8x64xf32>
    %171 = arith.mulf %167, %170 : vector<8x64xf32>
    %172 = math.erf %171 : vector<8x64xf32>
    %cst_42 = arith.constant 1.000000e+00 : f32
    %173 = vector.broadcast %cst_42 : f32 to vector<8x64xf32>
    %174 = arith.addf %173, %172 : vector<8x64xf32>
    %175 = arith.mulf %169, %174 : vector<8x64xf32>
    %c0_43 = arith.constant 0 : index
    %c0_44 = arith.constant 0 : index
    %176 = vector.load %arg4[%c0_43, %c0_44] : memref<64x64xf32, #tpu.memory_space<vmem>>, vector<64x64xf32>
    %cst_45 = arith.constant dense<0.000000e+00> : vector<8x64xf32>
    %177 = tpu.matmul %175, %176, %cst_45 {dimension_numbers = #tpu.dot_dimension_numbers<[1], [0], [0], [1], [0, 0, 1, 1], [], []>} : vector<8x64xf32>, vector<64x64xf32>, vector<8x64xf32> -> vector<8x64xf32>
    %c0_46 = arith.constant 0 : index
    %c0_47 = arith.constant 0 : index
    %178 = vector.load %arg5[%c0_46, %c0_47] : memref<1x64xf32, #tpu.memory_space<vmem>>, vector<1x64xf32>
    %179 = vector.broadcast %178 : vector<1x64xf32> to vector<8x64xf32>
    %180 = arith.addf %177, %179 : vector<8x64xf32>
    %c0_48 = arith.constant 0 : index
    %c0_49 = arith.constant 0 : index
    %181 = vector.load %arg6[%c0_48, %c0_49] : memref<8x64xf32, #tpu.memory_space<vmem>>, vector<8x64xf32>
    tpu.vector_store %arg6[%c0_48, %c0_49], %180 {strides = array<i32>} : memref<8x64xf32, #tpu.memory_space<vmem>>, vector<8x64xf32>,
    return
  }
}

</mosaic_0001>

<bundles_post_ra>
// kernel: time_embedding_forward.1
= control target key start
LH: loop header
LB: loop body
LE: loop exit
PB: predicated region body
PF: predicated region fallthrough
CT: control target
= control target key end

     0   :  { %11 = vsyncpa [#allocation3], 0  ;;  %s726_s0 = inlined_call_operand.vmem [shape: s32[8,1], index: 0, kind: input, shape index: {}]   ;;  %s727_s1 = inlined_call_operand.vmem [shape: f32[16,32], index: 1, kind: input, shape index: {}]   ;;  %s728_s2 = inlined_call_operand.hbm [shape: f32[32,64], index: 2, kind: input, shape index: {}]   ;;  %s729_s3 = inlined_call_operand.vmem [shape: f32[1,64], index: 3, kind: input, shape index: {}]   ;;  %s730_s4 = inlined_call_operand.hbm [shape: f32[64,64], index: 4, kind: input, shape index: {}]   ;;  %s731_s5 = inlined_call_operand.vmem [shape: f32[1,64], index: 5, kind: input, shape index: {}]   ;;  %s732_s6 = inlined_call_operand.hbm [shape: f32[8,64], index: 6, kind: output, shape index: {}]  }
   0x1   :  { %12 = vsyncpa [#allocation6], 0 }
   0x2   :  { %13 = vsyncpa [#allocation4], 0  ;;  %s615_s21 = smov [#allocation2]   ;;  %s543_s25 = scalar_lea.hbm %s728_s2, 512 }
   0x3   :  { %s23_s22 = sshll.u32 %s615_s21, 4  ;;  %p544_p0 = scmp.ne.s32.totalorder %s728_s2, %s543_s25  ;;  %s24_s22 = int_to_ptr.vmem [resolvable:$true] %s23_s22 }
   0x4   :  { %p547_p1 = scmp.lt.u32.totalorder %s543_s25, %s728_s2 }
   0x6   :  { %p549_p2 = pnand %p547_p1, %p544_p0 }
   0x8   :  { %552 = shalt.err (!%p549_p2)
}
   0x9   :  { %s553_s30 = scalar_lea.vmem %s24_s22, 512  ;;  %p558_p4 = scmp.lt.s32.totalorder %s24_s22, %s24_s22 }
   0xa   :  { %p554_p3 = scmp.ne.s32.totalorder %s24_s22, %s553_s30  ;;  %p559_p5 = scmp.lt.s32.totalorder %s553_s30, %s553_s30 }
   0xc   :  { %p560_p6 = por %p559_p5, %p558_p4 }
   0xe   :  { %p561_p7 = pnand %p560_p6, %p554_p3 }
  0x10   :  { %564 = shalt.err (!%p561_p7)
}
  0x11   :  { %s616_s7 = smov 128   ;;  %s617_s8 = smov 8  }
  0x12   :  { %29 = dma.hbm_to_vmem [thread:$0]  %s728_s2, 512, %s24_s22, [#allocation3], %s616_s7, %s616_s7, %s617_s8  }
  0x13   :  { %s618_s11 = smov [#allocation5]   ;;  %s565_s15 = scalar_lea.hbm %s730_s4, 1024 }
  0x14   :  { %s37_s12 = sshll.u32 %s618_s11, 4  ;;  %p566_p8 = scmp.ne.s32.totalorder %s730_s4, %s565_s15  ;;  %s38_s12 = int_to_ptr.vmem [resolvable:$true] %s37_s12 }
  0x15   :  { %p569_p9 = scmp.lt.u32.totalorder %s565_s15, %s730_s4 }
  0x17   :  { %p571_p10 = pnand %p569_p9, %p566_p8 }
  0x19   :  { %574 = shalt.err (!%p571_p10)
}
  0x1a   :  { %s575_s20 = scalar_lea.vmem %s38_s12, 1024  ;;  %p580_p12 = scmp.lt.s32.totalorder %s38_s12, %s38_s12 }
  0x1b   :  { %p576_p11 = scmp.ne.s32.totalorder %s38_s12, %s575_s20  ;;  %p581_p13 = scmp.lt.s32.totalorder %s575_s20, %s575_s20 }
  0x1d   :  { %p582_p0 = por %p581_p13, %p580_p12 }
  0x1f   :  { %p583_p1 = pnand %p582_p0, %p576_p11 }
  0x21   :  { %586 = shalt.err (!%p583_p1)
}
  0x22   :  { %43 = dma.hbm_to_vmem [thread:$0]  %s730_s4, 1024, %s38_s12, [#allocation6], %s616_s7, %s616_s7, %s617_s8  }
  0x23   :  { %609 = dma.done.wait [#allocation3], 512  }
  0x24   :  { %610 = vsyncadd [#allocation3], 4294966784 }
  0x25   :  { %611 = dma.done.wait [#allocation6], 1024  }
  0x26   :  { %612 = vsyncadd [#allocation6], 4294966272  ;;  %v619_v0 = vmov 0   ;;  %v52_v1 = vld [vmem:[%s726_s0] sm:$0xff]  ;;  %v620_v2 = vmov 0.0   ;;  %v264_v20 = vld [vmem:[#allocation2 + $0x8] sm:$0xff]  ;;  %v62_v27 = vlaneseq }
  0x27   :  { %540 = vset.pattern.permute.xlu1 %v619_v0  ;;  %534 = vset.pattern.permute.xlu0 %v619_v0  ;;  %vm94_vm0 = vcmp.eq.s32.totalorder %v52_v1, 3  ;;  %vm55_vm1 = vcmp.eq.s32.totalorder %v52_v1, 0  ;;  %vm68_vm2 = vcmp.eq.s32.totalorder %v52_v1, 1  ;;  %vm107_vm3 = vcmp.eq.s32.totalorder %v52_v1, 4  ;;  %v263_v19 = vld [vmem:[#allocation2] sm:$0xff]  ;;  %v265_v24 = vld [vmem:[#allocation2 + $0x10] sm:$0xff] }
  0x28   :  { %v95_v3 = vsel %vm94_vm0, 1.0, %v620_v2  ;;  %v56_v4 = vsel %vm55_vm1, 1.0, %v620_v2  ;;  %v69_v5 = vsel %vm68_vm2, 1.0, %v620_v2  ;;  %vm81_vm4 = vcmp.eq.s32.totalorder %v52_v1, 2  ;;  %v266_v25 = vld [vmem:[#allocation2 + $0x18] sm:$0xff]  ;;  %v53_v31 = vld [vmem:[%s727_s1] sm:$0xff] }
  0x29   :  { %98 = vperm.xlu1 %540, %v95_v3   ;;  %v535_v6 = vpack.i.bf16 %v69_v5, %v56_v4  ;;  %v108_v7 = vsel %vm107_vm3, 1.0, %v620_v2  ;;  %vm133_vm5 = vcmp.eq.s32.totalorder %v52_v1, 6  ;;  %v82_v8 = vsel %vm81_vm4, 1.0, %v620_v2  ;;  %v54_v61 = vld [vmem:[%s727_s1 + $0x8] sm:$0xff]  ;;  %s623_s29 = smov [#allocation7]  }
  0x2a   :  { %vm120_vm6 = vcmp.eq.s32.totalorder %v52_v1, 5  ;;  %v134_v9 = vsel %vm133_vm5, 1.0, %v620_v2  ;;  %vm159_vm7 = vcmp.eq.s32.totalorder %v52_v1, 8  ;;  %vm146_vm8 = vcmp.eq.s32.totalorder %v52_v1, 7  ;;  %s449_s30 = sshll.u32 %s623_s29, 4  ;;  %s450_s30 = int_to_ptr.vmem [resolvable:$true] %s449_s30 }
  0x2b   :  { %536 = vperm.xlu0 %534, %v535_v6   ;;  %v121_v10 = vsel %vm120_vm6, 1.0, %v620_v2  ;;  %v160_v11 = vsel %vm159_vm7, 1.0, %v620_v2  ;;  %vm185_vm9 = vcmp.eq.s32.totalorder %v52_v1, 10  ;;  %v147_v12 = vsel %vm146_vm8, 1.0, %v620_v2  ;;  %p592_p3 = scmp.lt.s32.totalorder %s450_s30, %s450_s30 }
  0x2c   :  { %vm172_vm10 = vcmp.eq.s32.totalorder %v52_v1, 9  ;;  %v186_v13 = vsel %vm185_vm9, 1.0, %v620_v2  ;;  %vm211_vm11 = vcmp.eq.s32.totalorder %v52_v1, 12  ;;  %vm198_vm12 = vcmp.eq.s32.totalorder %v52_v1, 11 }
  0x2d   :  { %111 = vperm.xlu1 %540, %v108_v7   ;;  %v173_v14 = vsel %vm172_vm10, 1.0, %v620_v2  ;;  %v212_v15 = vsel %vm211_vm11, 1.0, %v620_v2  ;;  %vm237_vm13 = vcmp.eq.s32.totalorder %v52_v1, 14  ;;  %v199_v16 = vsel %vm198_vm12, 1.0, %v620_v2 }
  0x2e   :  { %vm224_vm14 = vcmp.eq.s32.totalorder %v52_v1, 13  ;;  %v238_v17 = vsel %vm237_vm13, 1.0, %v620_v2  ;;  %vm250_vm15 = vcmp.eq.s32.totalorder %v52_v1, 15  ;;  %v508_v22 = vpack.c.bf16 %v264_v20, %v263_v19 }
  0x2f   :  { %85 = vperm.xlu0 %534, %v82_v8   ;;  %v225_v18 = vsel %vm224_vm14, 1.0, %v620_v2  ;;  %v251_v21 = vsel %vm250_vm15, 1.0, %v620_v2  ;;  %v621_v23 = vmov 0.0|0.0   ;;  %v511_v26 = vpack.c.bf16 %v266_v25, %v265_v24 }
  0x30   :  { %507 = vmatprep.subr.bf16.mxu0 %v621_v23  ;;  %513 = vmatprep.subr.bf16.mxu1 %v621_v23  ;;  %vm622_vm0 = vmmov 0   ;;  %v689_v28 = vshrl.u32 %v62_v27, 7  ;;  %vm274_vm1 = vcmask 261120   ;;  %vm368_vm2 = vcmask 523264  }
  0x31   :  { %137 = vperm.xlu1 %540, %v134_v9   ;;  %509 = vmatpush3.bf16.msra.mxu0 %v508_v22 }
  0x32   :  { %510 = vmatprep.subr.bf16.mxu0 %v621_v23  ;;  %485 = vmatprep.mubr.msk.f32.mxu0 %vm622_vm0, %v620_v2  ;;  %v64_v29 = vsub.s32 0, %v689_v28  ;;  %v77_v30 = vsub.s32 1, %v689_v28  ;;  %v90_v32 = vsub.s32 2, %v689_v28  ;;  %v103_v34 = vsub.s32 3, %v689_v28 }
  0x33   :  { %124 = vperm.xlu0 %534, %v121_v10   ;;  %504 = vmatprep.mubr.msk.f32.mxu1 %vm622_vm0, %v620_v2  ;;  %v116_v40 = vsub.s32 4, %v689_v28  ;;  %v129_v46 = vsub.s32 5, %v689_v28  ;;  %v142_v51 = vsub.s32 6, %v689_v28  ;;  %v155_v56 = vsub.s32 7, %v689_v28 }
  0x34   :  { %v65_v35 = vrot.slane %v53_v31, %v64_v29  ;;  %v78_v36 = vrot.slane %v53_v31, %v77_v30  ;;  %v91_v41 = vrot.slane %v53_v31, %v90_v32  ;;  %v104_v43 = vrot.slane %v53_v31, %v103_v34 }
  0x35   :  { %163 = vperm.xlu1 %540, %v160_v11   ;;  %512 = vmatpush3.bf16.msra.mxu0 %v511_v26  ;;  %v117_v48 = vrot.slane %v53_v31, %v116_v40  ;;  %v130_v55 = vrot.slane %v53_v31, %v129_v46  ;;  %v143_v60 = vrot.slane %v53_v31, %v142_v51 }
  0x36   :  { %v156_v1 = vrot.slane %v53_v31, %v155_v56  ;;  %v169_v5 = vrot.slane %v54_v61, %v64_v29  ;;  %v182_v9 = vrot.slane %v54_v61, %v77_v30  ;;  %v234_v25 = vrot.slane %v54_v61, %v129_v46  ;;  %v357_v46 = vld [vmem:[#allocation5 + $0x20] sm:$0xff] }
  0x37   :  { %150 = vperm.xlu0 %534, %v147_v12   ;;  %v247_v29 = vrot.slane %v54_v61, %v142_v51 }
  0x39   :  { %189 = vperm.xlu1 %540, %v186_v13   ;;  %v195_v13 = vrot.slane %v54_v61, %v90_v32 }
  0x3b   :  { %176 = vperm.xlu0 %534, %v173_v14  }
  0x3d   :  { %215 = vperm.xlu1 %540, %v212_v15  }
  0x3f   :  { %202 = vperm.xlu0 %534, %v199_v16   ;;  %v208_v16 = vrot.slane %v54_v61, %v103_v34 }
  0x41   :  { %241 = vperm.xlu1 %540, %v238_v17  }
  0x43   :  { %228 = vperm.xlu0 %534, %v225_v18  }
  0x47   :  { %254 = vperm.xlu0 %534, %v251_v21   ;;  %v221_v21 = vrot.slane %v54_v61, %v116_v40  ;;  %v353_v40 = vld [vmem:[#allocation5] sm:$0xff] }
  0xa8   :  { %v99_v33 = vpop.permute.xlu1 %98 }
  0xa9   :  { %v105_v53 = vmul.f32 %v104_v43, %v99_v33  ;;  %v355_v43 = vld [vmem:[#allocation5 + $0x10] sm:$0xff] }
  0xaa   :  { %v537_v37 = vpop.permute.xlu0 %536 }
  0xab   :  { %v539_v38 = vunpack.i.h.bf16 %v537_v37  ;;  %v538_v39 = vunpack.i.l.bf16 %v537_v37 }
  0xac   :  { %v112_v42 = vpop.permute.xlu1 %111 }
  0xad   :  { %v79_v44 = vmul.f32 %v539_v38, %v78_v36  ;;  %v66_v45 = vmul.f32 %v538_v39, %v65_v35  ;;  %v118_v58 = vmul.f32 %v117_v48, %v112_v42  ;;  %v260_v35 = vrot.slane %v54_v61, %v155_v56 }
  0xae   :  { %v86_v47 = vpop.permute.xlu0 %85 }
  0xaf   :  { %v80_v49 = vadd.f32 %v79_v44, %v66_v45  ;;  %v92_v50 = vmul.f32 %v91_v41, %v86_v47  ;;  %v354_v41 = vld [vmem:[#allocation5 + $0x8] sm:$0xff]  ;;  %v356_v44 = vld [vmem:[#allocation5 + $0x18] sm:$0xff] }
  0xb0   :  { %v138_v52 = vpop.permute.xlu1 %137  ;;  %v514_v42 = vpack.c.bf16 %v354_v41, %v353_v40  ;;  %v517_v45 = vpack.c.bf16 %v356_v44, %v355_v43  ;;  %v358_v47 = vld [vmem:[#allocation5 + $0x28] sm:$0xff] }
  0xb1   :  { %v93_v54 = vadd.f32 %v92_v50, %v80_v49  ;;  %v144_v3 = vmul.f32 %v143_v60, %v138_v52  ;;  %v520_v48 = vpack.c.bf16 %v358_v47, %v357_v46  ;;  %v359_v49 = vld [vmem:[#allocation5 + $0x30] sm:$0xff]  ;;  %v360_v50 = vld [vmem:[#allocation5 + $0x38] sm:$0xff]  ;;  %v459_v52 = vld [vmem:[%s729_s3] ss:$0 sm:$0xff]  ;;  %s587_s3 = scalar_lea.vmem %s450_s30, 128 }
  0xb2   :  { %v125_v57 = vpop.permute.xlu0 %124  ;;  %515 = vmatpush3.bf16.msra.mxu1 %v514_v42  ;;  %v523_v51 = vpack.c.bf16 %v360_v50, %v359_v49  ;;  %p588_p2 = scmp.ne.s32.totalorder %s450_s30, %s587_s3  ;;  %p593_p4 = scmp.lt.s32.totalorder %s587_s3, %s587_s3 }
  0xb3   :  { %v106_v59 = vadd.f32 %v105_v53, %v93_v54  ;;  %v131_v0 = vmul.f32 %v130_v55, %v125_v57  ;;  %516 = vmatprep.subr.bf16.mxu1 %v621_v23 }
  0xb4   :  { %v164_v62 = vpop.permute.xlu1 %163  ;;  %p594_p5 = por %p593_p4, %p592_p3 }
  0xb5   :  { %v119_v63 = vadd.f32 %v118_v58, %v106_v59  ;;  %v170_v11 = vmul.f32 %v169_v5, %v164_v62 }
  0xb6   :  { %v151_v2 = vpop.permute.xlu0 %150  ;;  %518 = vmatpush3.bf16.msra.mxu1 %v517_v45  ;;  %p595_p6 = pnand %p594_p5, %p588_p2 }
  0xb7   :  { %v132_v4 = vadd.f32 %v131_v0, %v119_v63  ;;  %v157_v8 = vmul.f32 %v156_v1, %v151_v2  ;;  %519 = vmatprep.subr.bf16.mxu1 %v621_v23 }
  0xb8   :  { %v190_v6 = vpop.permute.xlu1 %189 }
  0xb9   :  { %v145_v7 = vadd.f32 %v144_v3, %v132_v4  ;;  %v196_v19 = vmul.f32 %v195_v13, %v190_v6 }
  0xba   :  { %v177_v10 = vpop.permute.xlu0 %176  ;;  %521 = vmatpush3.bf16.msra.mxu1 %v520_v48 }
  0xbb   :  { %v158_v12 = vadd.f32 %v157_v8, %v145_v7  ;;  %v183_v15 = vmul.f32 %v182_v9, %v177_v10  ;;  %522 = vmatprep.subr.bf16.mxu1 %v621_v23  ;;  %v461_v23 = vld [vmem:[%s731_s5] ss:$0 sm:$0xff] }
  0xbc   :  { %v216_v17 = vpop.permute.xlu1 %215 }
  0xbd   :  { %v171_v14 = vadd.f32 %v170_v11, %v158_v12  ;;  %v222_v27 = vmul.f32 %v221_v21, %v216_v17 }
  0xbe   :  { %v203_v18 = vpop.permute.xlu0 %202  ;;  %524 = vmatpush3.bf16.msra.mxu1 %v523_v51 }
  0xbf   :  { %v184_v20 = vadd.f32 %v183_v15, %v171_v14  ;;  %v209_v24 = vmul.f32 %v208_v16, %v203_v18 }
  0xc0   :  { %v242_v30 = vpop.permute.xlu1 %241 }
  0xc1   :  { %v197_v22 = vadd.f32 %v196_v19, %v184_v20  ;;  %v248_v36 = vmul.f32 %v247_v29, %v242_v30 }
  0xc2   :  { %v229_v26 = vpop.permute.xlu0 %228 }
  0xc3   :  { %v210_v28 = vadd.f32 %v209_v24, %v197_v22  ;;  %v235_v33 = vmul.f32 %v234_v25, %v229_v26 }
  0xc5   :  { %v223_v31 = vadd.f32 %v222_v27, %v210_v28 }
  0xc6   :  { %v255_v32 = vpop.permute.xlu0 %254 }
  0xc7   :  { %v236_v37 = vadd.f32 %v235_v33, %v223_v31  ;;  %v261_v38 = vmul.f32 %v260_v35, %v255_v32 }
  0xc9   :  { %v249_v34 = vadd.f32 %v248_v36, %v236_v37 }
  0xcb   :  { %v262_v39 = vadd.f32 %v261_v38, %v249_v34 }
  0xcd   :  { %486 = vmatmul.mubr.msk.f32.vlgmr.msra.gmra.mrb[0].mxu0 %vm274_vm1, %v262_v39 }
 0x1a0   :  { %v344_v53 = vpop.f32.mrb[0].mxu0 }
 0x1a1   :  { %v345_v54 = vadd.f32 %v459_v52, %v344_v53  ;;  %v487_v55 = vpop.f32.mrb[1].mxu0 }
 0x1a3   :  { %v349_v56 = vmul.f32 0.70710677, %v345_v54  ;;  %v348_v58 = vmul.f32 0.5, %v345_v54 }
 0x1a5   :  { %541 = verf.f32 %v349_v56 }
 0x1af   :  { %v542_v57 = vpop.eup %541 }
 0x1b0   :  { %v351_v59 = vadd.f32 1.0, %v542_v57 }
 0x1b2   :  { %v352_v60 = vmul.f32 %v351_v59, %v348_v58 }
 0x1b4   :  { %505 = vmatmul.mubr.msk.f32.vlgmr.msra.gmra.mrb[0].mxu1 %vm368_vm2, %v352_v60 }
 0x287   :  { %v438_v61 = vpop.f32.mrb[0].mxu1 }
 0x288   :  { %v439_v62 = vadd.f32 %v461_v23, %v438_v61  ;;  %v506_v63 = vpop.f32.mrb[1].mxu1 }
 0x28a   :  { %442 = vst.msk [vmem:[#allocation7] sm:$0xff] %vm368_vm2, %v439_v62 }
 0x28b   :  { %598 = shalt.err (!%p595_p6)
}
 0x28c   :  { %s599_s9 = scalar_lea.hbm %s732_s6, 128 }
 0x28d   :  { %p600_p7 = scmp.ne.s32.totalorder %s732_s6, %s599_s9  ;;  %p603_p8 = scmp.lt.u32.totalorder %s599_s9, %s732_s6 }
 0x28f   :  { %p605_p9 = pnand %p603_p8, %p600_p7 }
 0x291   :  { %608 = shalt.err (!%p605_p9)
}
 0x292   :  { %452 = dma.vmem_to_hbm [thread:$0]  %s450_s30, 128, %s732_s6, [#allocation4]  }
 0x293   :  { %613 = dma.done.wait [#allocation4], 128  }
 0x294   :  { %614 = vsyncadd [#allocation4], 4294967168 }
 0x295   :  { %456 = vsyncpa [#allocation3], 1 }
 0x296   :  { %457 = vsyncpa [#allocation6], 1 }
 0x297   :  { %458 = vsyncpa [#allocation4], 1 }

</bundles_post_ra>
